<compile_context>
chip_gen: v7x
topology: tpu7x:2x2x1
jax: 0.10.0
libtpu: 0.0.40
codegen_flags: <defaults>
</compile_context>

<pallas_src>
import functools

import jax
import jax.numpy as jnp
from jax.experimental import pallas as pl
from jax.experimental.pallas import tpu as pltpu

HIDDEN = 128
LANE = 128          # lane-padded Q-head width (real out_dim is sliced in the wrapper)
IN_PAD = 8          # fc1 contraction dim padded 4 -> 8 (sublane-aligned for the MXU)
MAX_BLOCK_B = 2048  # cap rows per batch tile so VMEM stays tiny even for huge batches


def dqn_mlp_kernel(x_ref, w1_ref, b1_ref, w2_ref, b2_ref, w3_ref, b3_ref, o_ref):
    # ---- fc1 + ReLU on the MXU (bf16 in, f32 acc); zero-padded K rows are inert ----
    x = x_ref[...].astype(jnp.bfloat16)                       # (tb, IN_PAD)
    h1 = jnp.dot(x, w1_ref[...], preferred_element_type=jnp.float32) + b1_ref[...]
    h1 = jnp.maximum(h1, 0.0)                                 # (tb, H) f32

    # ---- fc2 + ReLU on the MXU ------------------------------------------------------
    h2 = jnp.dot(h1.astype(jnp.bfloat16), w2_ref[...],
                 preferred_element_type=jnp.float32) + b2_ref[...]
    h2 = jnp.maximum(h2, 0.0)

    # ---- fc3 (lane-padded Q head): dense (tb, LANE) bf16 store ------------------------
    q = jnp.dot(h2.astype(jnp.bfloat16), w3_ref[...],
                preferred_element_type=jnp.float32) + b3_ref[...]
    o_ref[...] = q.astype(o_ref.dtype)


def _grid_for_batch(batch):
    # Per-grid-step overhead (~0.35us) dominates this tiny network, so use as few
    # steps as possible: 1 for tiny batches, else 2 so both of v7x's TensorCores get a
    # tile (harmless on v5e/v6e), more only if one tile would exceed MAX_BLOCK_B rows.
    nb = 1 if batch <= 8 else max(2, pl.cdiv(batch, MAX_BLOCK_B))
    block_b = ((pl.cdiv(batch, nb) + 15) // 16) * 16   # 16-row align (bf16 output tile)
    return nb, block_b


@functools.partial(jax.jit, static_argnums=(7,))
def _dqn_forward(x, w1, b1, w2, b2, w3, b3, out_dim):
    B, in_dim = x.shape
    nb, block_b = _grid_for_batch(B)
    B_pad = nb * block_b
    if B_pad != B or in_dim != IN_PAD:
        x = jnp.pad(x, ((0, B_pad - B), (0, IN_PAD - in_dim)))

    # Weights/biases: whole-array blocks with constant index_maps -> VMEM-resident
    # across all batch tiles.
    const = lambda arr: pl.BlockSpec(arr.shape, lambda i: (0, 0))

    q_pad = pl.pallas_call(
        dqn_mlp_kernel,
        out_shape=jax.ShapeDtypeStruct((B_pad, LANE), jnp.bfloat16),
        grid=(nb,),
        in_specs=[
            pl.BlockSpec((block_b, IN_PAD), lambda i: (i, 0)),   # x: tiled over batch
            const(w1), const(b1),
            const(w2), const(b2),
            const(w3), const(b3),
        ],
        out_specs=pl.BlockSpec((block_b, LANE), lambda i: (i, 0)),
        compiler_params=pltpu.CompilerParams(
            dimension_semantics=("parallel",)),   # shards batch tiles over v7x's 2 TCs
    )(x, w1, b1, w2, b2, w3, b3)

    # TODO(synk): fuse the DQN-step consumer (action argmax / q[a] gather / TD target /
    # Huber loss) into the kernel so the padded Q slab never round-trips HBM; here we
    # keep the module's plain forward() interface.
    return q_pad[:B, :out_dim].astype(jnp.float32)


def dqn_forward(x, params):
    """x: (B, input_dim) float32; params from init_dqn_params. Returns (B, out_dim) f32."""
    return _dqn_forward(x, params["w1"], params["b1"], params["w2"], params["b2"],
                        params["w3"], params["b3"], params["out_dim"])


def init_dqn_params(key, input_dim, output_dim, hidden=HIDDEN):
    """PyTorch-style uniform init. Weights stored as (in, out) = W.T vs torch.

    fc1 weight is zero-padded along K (input_dim -> IN_PAD); the Q head is zero-padded
    to LANE columns for lane-dense stores. fc weights stored bf16, biases f32.
    """
    def linear(k, fan_in, fan_out):
        kw, kb = jax.random.split(k)
        bound = 1.0 / jnp.sqrt(fan_in)
        w = jax.random.uniform(kw, (fan_in, fan_out), jnp.float32, -bound, bound)
        b = jax.random.uniform(kb, (1, fan_out), jnp.float32, -bound, bound)
        return w, b

    k1, k2, k3 = jax.random.split(key, 3)
    w1, b1 = linear(k1, input_dim, hidden)
    w2, b2 = linear(k2, hidden, hidden)
    w3, b3 = linear(k3, hidden, output_dim)

    w1p = jnp.zeros((IN_PAD, hidden), jnp.float32).at[:input_dim, :].set(w1)
    w3p = jnp.zeros((hidden, LANE), jnp.float32).at[:, :output_dim].set(w3)
    b3p = jnp.zeros((1, LANE), jnp.float32).at[:, :output_dim].set(b3)

    return {
        "w1": w1p.astype(jnp.bfloat16), "b1": b1,
        "w2": w2.astype(jnp.bfloat16), "b2": b2,
        "w3": w3p.astype(jnp.bfloat16), "b3": b3p,
        "out_dim": output_dim,
    }


def dqn_reference(x, p):
    """Pure-JAX reference mirroring the kernel's bf16-input / f32-accumulate numerics."""
    w1 = p["w1"][: x.shape[1], :]                       # drop zero-padded K rows
    h1 = jnp.maximum(jnp.dot(x.astype(jnp.bfloat16), w1,
                             preferred_element_type=jnp.float32) + p["b1"], 0.0)
    h2 = jnp.maximum(jnp.dot(h1.astype(jnp.bfloat16), p["w2"],
                             preferred_element_type=jnp.float32) + p["b2"], 0.0)
    q = jnp.dot(h2.astype(jnp.bfloat16), p["w3"],
                preferred_element_type=jnp.float32) + p["b3"]
    return q.astype(jnp.bfloat16).astype(jnp.float32)[:, :p["out_dim"]]


if __name__ == "__main__":
    # CartPole-v1: observation dim = 4, action dim = 2. Small replay-style batch:
    # 32 rows -> 2 batch tiles of 16 rows (one per v7x TensorCore; single-chip on v5e/v6e).
    input_dim, output_dim = 4, 2
    batch = 32

    key = jax.random.PRNGKey(0)
    kx, kp = jax.random.split(key)
    x = jax.random.normal(kx, (batch, input_dim), dtype=jnp.float32)
    params = init_dqn_params(kp, input_dim, output_dim)

    q_values = jax.block_until_ready(dqn_forward(x, params))
    ref = dqn_reference(x, params)

    assert q_values.shape == (batch, output_dim)
    # Tolerance covers one bf16 ulp of rounding-boundary wiggle between the kernel's
    # MXU accumulation order and the XLA reference (both use bf16-in / f32-acc).
    assert jnp.allclose(q_values, ref, atol=1e-2, rtol=1e-2), \
        float(jnp.max(jnp.abs(q_values - ref)))

    print("KERNEL_OK")
</pallas_src>

<mosaic_0001>
module attributes {stable_mosaic.version = 11 : i64} {
  func.func @dqn_mlp_kernel(%arg0: i32, %arg1: memref<16x8xf32, #tpu.memory_space<vmem>>, %arg2: memref<8x128xbf16, #tpu.memory_space<vmem>>, %arg3: memref<1x128xf32, #tpu.memory_space<vmem>>, %arg4: memref<128x128xbf16, #tpu.memory_space<vmem>>, %arg5: memref<1x128xf32, #tpu.memory_space<vmem>>, %arg6: memref<128x128xbf16, #tpu.memory_space<vmem>>, %arg7: memref<1x128xf32, #tpu.memory_space<vmem>>, %arg8: memref<16x128xbf16, #tpu.memory_space<vmem>>) attributes {dimension_semantics = [#tpu.dimension_semantics<parallel>], iteration_bounds = array<i64: 2>, scalar_prefetch = 0 : i64, scratch_operands = 0 : i64, tpu.core_type = #tpu.core_type<tc>, window_params = [{transform_indices = @transform_0, window_bounds = array<i64: 16, 8>}, {pipeline_mode = #tpu.pipeline_mode<synchronous>, transform_indices = @transform_1, window_bounds = array<i64: 8, 128>}, {pipeline_mode = #tpu.pipeline_mode<synchronous>, transform_indices = @transform_2, window_bounds = array<i64: 1, 128>}, {pipeline_mode = #tpu.pipeline_mode<synchronous>, transform_indices = @transform_3, window_bounds = array<i64: 128, 128>}, {pipeline_mode = #tpu.pipeline_mode<synchronous>, transform_indices = @transform_4, window_bounds = array<i64: 1, 128>}, {pipeline_mode = #tpu.pipeline_mode<synchronous>, transform_indices = @transform_5, window_bounds = array<i64: 128, 128>}, {pipeline_mode = #tpu.pipeline_mode<synchronous>, transform_indices = @transform_6, window_bounds = array<i64: 1, 128>}, {transform_indices = @transform_7, window_bounds = array<i64: 16, 128>}]} {
    %c0 = arith.constant 0 : index
    %c0_0 = arith.constant 0 : index
    %0 = vector.load %arg1[%c0, %c0_0] : memref<16x8xf32, #tpu.memory_space<vmem>>, vector<16x8xf32>
    %1 = arith.truncf %0 : vector<16x8xf32> to vector<16x8xbf16>
    %c0_1 = arith.constant 0 : index
    %c0_2 = arith.constant 0 : index
    %2 = vector.load %arg2[%c0_1, %c0_2] : memref<8x128xbf16, #tpu.memory_space<vmem>>, vector<8x128xbf16>
    %cst = arith.constant dense<0.000000e+00> : vector<16x128xf32>
    %3 = tpu.matmul %1, %2, %cst {dimension_numbers = #tpu.dot_dimension_numbers<[1], [0], [0], [1], [0, 0, 1, 1], [], []>} : vector<16x8xbf16>, vector<8x128xbf16>, vector<16x128xf32> -> vector<16x128xf32>
    %c0_3 = arith.constant 0 : index
    %c0_4 = arith.constant 0 : index
    %4 = vector.load %arg3[%c0_3, %c0_4] : memref<1x128xf32, #tpu.memory_space<vmem>>, vector<1x128xf32>
    %5 = vector.broadcast %4 : vector<1x128xf32> to vector<16x128xf32>
    %6 = arith.addf %3, %5 : vector<16x128xf32>
    %cst_5 = arith.constant 0.000000e+00 : f32
    %7 = vector.broadcast %cst_5 : f32 to vector<16x128xf32>
    %8 = arith.maximumf %6, %7 : vector<16x128xf32>
    %9 = arith.truncf %8 : vector<16x128xf32> to vector<16x128xbf16>
    %c0_6 = arith.constant 0 : index
    %c0_7 = arith.constant 0 : index
    %10 = vector.load %arg4[%c0_6, %c0_7] : memref<128x128xbf16, #tpu.memory_space<vmem>>, vector<128x128xbf16>
    %cst_8 = arith.constant dense<0.000000e+00> : vector<16x128xf32>
    %11 = tpu.matmul %9, %10, %cst_8 {dimension_numbers = #tpu.dot_dimension_numbers<[1], [0], [0], [1], [0, 0, 1, 1], [], []>} : vector<16x128xbf16>, vector<128x128xbf16>, vector<16x128xf32> -> vector<16x128xf32>
    %c0_9 = arith.constant 0 : index
    %c0_10 = arith.constant 0 : index
    %12 = vector.load %arg5[%c0_9, %c0_10] : memref<1x128xf32, #tpu.memory_space<vmem>>, vector<1x128xf32>
    %13 = vector.broadcast %12 : vector<1x128xf32> to vector<16x128xf32>
    %14 = arith.addf %11, %13 : vector<16x128xf32>
    %cst_11 = arith.constant 0.000000e+00 : f32
    %15 = vector.broadcast %cst_11 : f32 to vector<16x128xf32>
    %16 = arith.maximumf %14, %15 : vector<16x128xf32>
    %17 = arith.truncf %16 : vector<16x128xf32> to vector<16x128xbf16>
    %c0_12 = arith.constant 0 : index
    %c0_13 = arith.constant 0 : index
    %18 = vector.load %arg6[%c0_12, %c0_13] : memref<128x128xbf16, #tpu.memory_space<vmem>>, vector<128x128xbf16>
    %cst_14 = arith.constant dense<0.000000e+00> : vector<16x128xf32>
    %19 = tpu.matmul %17, %18, %cst_14 {dimension_numbers = #tpu.dot_dimension_numbers<[1], [0], [0], [1], [0, 0, 1, 1], [], []>} : vector<16x128xbf16>, vector<128x128xbf16>, vector<16x128xf32> -> vector<16x128xf32>
    %c0_15 = arith.constant 0 : index
    %c0_16 = arith.constant 0 : index
    %20 = vector.load %arg7[%c0_15, %c0_16] : memref<1x128xf32, #tpu.memory_space<vmem>>, vector<1x128xf32>
    %21 = vector.broadcast %20 : vector<1x128xf32> to vector<16x128xf32>
    %22 = arith.addf %19, %21 : vector<16x128xf32>
    %23 = arith.truncf %22 : vector<16x128xf32> to vector<16x128xbf16>
    %c0_17 = arith.constant 0 : index
    %c0_18 = arith.constant 0 : index
    %24 = vector.load %arg8[%c0_17, %c0_18] : memref<16x128xbf16, #tpu.memory_space<vmem>>, vector<16x128xbf16>
    tpu.vector_store %arg8[%c0_17, %c0_18], %23 {strides = array<i32>} : memref<16x128xbf16, #tpu.memory_space<vmem>>, vector<16x128xbf16>,
    return
  }
  func.func @transform_0(%arg0: i32) -> (i32, i32) {
    %c0_i32 = arith.constant 0 : i32
    %c0_i32_0 = arith.constant 0 : i32
    return %arg0, %c0_i32 : i32, i32
  }
  func.func @transform_1(%arg0: i32) -> (i32, i32) {
    %c0_i32 = arith.constant 0 : i32
    %c0_i32_0 = arith.constant 0 : i32
    %c0_i32_1 = arith.constant 0 : i32
    return %c0_i32, %c0_i32_0 : i32, i32
  }
  func.func @transform_2(%arg0: i32) -> (i32, i32) {
    %c0_i32 = arith.constant 0 : i32
    %c0_i32_0 = arith.constant 0 : i32
    %c0_i32_1 = arith.constant 0 : i32
    return %c0_i32, %c0_i32_0 : i32, i32
  }
  func.func @transform_3(%arg0: i32) -> (i32, i32) {
    %c0_i32 = arith.constant 0 : i32
    %c0_i32_0 = arith.constant 0 : i32
    %c0_i32_1 = arith.constant 0 : i32
    return %c0_i32, %c0_i32_0 : i32, i32
  }
  func.func @transform_4(%arg0: i32) -> (i32, i32) {
    %c0_i32 = arith.constant 0 : i32
    %c0_i32_0 = arith.constant 0 : i32
    %c0_i32_1 = arith.constant 0 : i32
    return %c0_i32, %c0_i32_0 : i32, i32
  }
  func.func @transform_5(%arg0: i32) -> (i32, i32) {
    %c0_i32 = arith.constant 0 : i32
    %c0_i32_0 = arith.constant 0 : i32
    %c0_i32_1 = arith.constant 0 : i32
    return %c0_i32, %c0_i32_0 : i32, i32
  }
  func.func @transform_6(%arg0: i32) -> (i32, i32) {
    %c0_i32 = arith.constant 0 : i32
    %c0_i32_0 = arith.constant 0 : i32
    %c0_i32_1 = arith.constant 0 : i32
    return %c0_i32, %c0_i32_0 : i32, i32
  }
  func.func @transform_7(%arg0: i32) -> (i32, i32) {
    %c0_i32 = arith.constant 0 : i32
    %c0_i32_0 = arith.constant 0 : i32
    return %arg0, %c0_i32 : i32, i32
  }
}

</mosaic_0001>

<bundles_post_ra>
// kernel: _dqn_forward.1
= control target key start
LH: loop header
LB: loop body
LE: loop exit
PB: predicated region body
PF: predicated region fallthrough
CT: control target
= control target key end

     0   :  { %12 = vsyncpa [#allocation3], 0  ;;  %s898_s24 = smov 0   ;;  %s1020_s0 = inlined_call_operand.vmem [shape: f32[32,8], index: 0, kind: input, shape index: {}]   ;;  %s1021_s1 = inlined_call_operand.vmem [shape: bf16[8,128], index: 1, kind: input, shape index: {}]   ;;  %s1022_s2 = inlined_call_operand.vmem [shape: f32[1,128], index: 2, kind: input, shape index: {}]   ;;  %s1023_s3 = inlined_call_operand.vmem [shape: bf16[128,128], index: 3, kind: input, shape index: {}]   ;;  %s1024_s4 = inlined_call_operand.vmem [shape: f32[1,128], index: 4, kind: input, shape index: {}]   ;;  %s1025_s5 = inlined_call_operand.hbm [shape: bf16[128,128], index: 5, kind: input, shape index: {}]   ;;  %s1026_s6 = inlined_call_operand.vmem [shape: f32[1,128], index: 6, kind: input, shape index: {}]   ;;  %s1027_s7 = inlined_call_operand.vmem [shape: bf16[32,128], index: 7, kind: output, shape index: {}]  }
   0x1 LB: > { %s666_s25 = sadd.s32 4294967295, %s851_s24   ;;  %p668_p0 = scmp.ge.s32.totalorder %s851_s24, 1  ;;  %s851_s24 = sphi %s898_s24, %s18_s24  }
   0x2   : > { %p201_p1 = scmp.lt.s32.totalorder %s851_s24, 3  ;;  %s853_s26 = smov [#allocation2]  }
   0x3   : > { %s225_s27 = sshll.u32 %s853_s26, 4  ;;  %p912_p3 = scmp.eq.s32.totalorder %s666_s25, 0  ;;  %s226_s27 = int_to_ptr.vmem [resolvable:$true] %s225_s27 }
   0x4   : > { %p906_p2 = pnand %p668_p0, %p201_p1  ;;  %s813_s10 = scalar_lea.hbm %s1025_s5, 1024 }
   0x5   : > { %s1032_s29 = scalar_select %p912_p3, 1, 0 }
   0x6   : > { %s1031_s28 = scalar_select %p906_p2, 1, 0 }
   0x7   : > { %p778_p4 = pneg %p906_p2  ;;  %p814_p6 = scmp.ne.s32.totalorder %s1025_s5, %s813_s10 }
   0x8   : > { %p820_p10 = scmp.lt.u32.totalorder %s813_s10, %s1025_s5 }
   0x9   : > { %p920_p5 = pnand %p912_p3, %p778_p4 }
   0xb   : > { %p815_p7 = pneg %p920_p5 }
   0xd   : > { %p816_p8 = pnand %p815_p7, %p814_p6 }
   0xf   : > { %p817_p9 = pneg %p816_p8 }
  0x11   : > { %p822_p11 = pnand %p820_p10, %p817_p9 }
  0x13   : > { %825 = shalt.err (!%p822_p11)
}
  0x14   : > { %s826_s15 = scalar_lea.vmem %s226_s27, 1024  ;;  %p834_p1 = scmp.lt.s32.totalorder %s226_s27, %s226_s27 }
  0x15   : > { %p827_p12 = scmp.ne.s32.totalorder %s226_s27, %s826_s15  ;;  %p835_p4 = scmp.lt.s32.totalorder %s826_s15, %s826_s15 }
  0x17   : > { %p829_p13 = pnand %p827_p12, %p815_p7  ;;  %p836_p3 = por %p835_p4, %p834_p1 }
  0x19   : > { %p830_p0 = pneg %p829_p13 }
  0x1b   : > { %p837_p2 = pnand %p836_p3, %p830_p0 }
  0x1d   : > { %840 = shalt.err (!%p837_p2)
}
  0x1e   : > { %s854_s16 = smov 64   ;;  %s855_s17 = smov 4  }
  0x1f   : > { %781 = dma.hbm_to_vmem [thread:$0]  (!%p920_p5), %s1025_s5, 1024, %s226_s27, [#allocation3], %s854_s16, %s854_s16, %s855_s17  }
  0x20   : > { %p1034_p6 = scmp.ne.s32.totalorder %s1031_s28, 0 }
  0x21   : > { %p1035_p8 = scmp.ne.s32.totalorder (!%p1034_p6), %s1032_s29, 0 }
  0x22   : > { %253 = sbr.rel (%p1034_p6) target bundleno = 710 (0x2c6), region = 48 }
  0x29   : > { %846 = dma.done.wait (%p1035_p8), [#allocation3], 1024  }
  0x2a   : > { %848 = vsyncadd (%p1035_p8), [#allocation3], 4294966272  ;;  %s673_s20 = sshll.u32 %s666_s25, 1  ;;  %v856_v0 = vmov 0.0   ;;  %vm857_vm0 = vmmov 0   ;;  %vm313_vm1 = vcmask 1043456  }
  0x2b   : > { %728 = vmatprep.subr.bf16.mxu0 %v856_v0  ;;  %730 = vmatprep.mubr.msk.bf16.mxu0 %vm857_vm0, %v856_v0  ;;  %p286_p2 = scmp.lt.s32.totalorder %s673_s20, 3  ;;  %v301_v1 = vld [vmem:[%s1021_s1] sm:$0xf]  ;;  %vm309_vm2 = vcmask 64512   ;;  %v798_v7 = vld [vmem:[%s1023_s3 + $0x8] sm:$0xff]   ;;  %v799_v8 = vld [vmem:[%s1023_s3 + $0x10] sm:$0xff]  }
  0x2c   : > { %734 = vmatprep.subr.bf16.mxu1 %v856_v0  ;;  %750 = vmatprep.mubr.msk.bf16.mxu1 %vm857_vm0, %v856_v0  ;;  %v315_v4 = vsel %vm313_vm1, %v301_v1, 0  ;;  %v797_v6 = vld [vmem:[%s1023_s3] sm:$0xff]   ;;  %v800_v9 = vld [vmem:[%s1023_s3 + $0x18] sm:$0xff]   ;;  %v802_v11 = vld [vmem:[%s1023_s3 + $0x28] sm:$0xff]  }
  0x2d   : > { %s1037_s20 = smov (!%p286_p2, %s673_s20), 3  ;;  %729 = vmatpush3.bf16.msra.mxu0 %v315_v4  ;;  %735 = vmatpush3.bf16.msra.mxu1 %v797_v6  ;;  %v801_v10 = vld [vmem:[%s1023_s3 + $0x20] sm:$0xff]   ;;  %v803_v12 = vld [vmem:[%s1023_s3 + $0x30] sm:$0xff]   ;;  %v804_v13 = vld [vmem:[%s1023_s3 + $0x38] sm:$0xff]  }
  0x2e   : > { %s674_s21 = sshll.u32 %s1037_s20, 3  ;;  %754 = vmatprep.subr.bf16.mxu0 %v856_v0  ;;  %736 = vmatprep.subr.bf16.mxu1 %v856_v0  ;;  %v805_v14 = vld [vmem:[#allocation2] sm:$0xff]   ;;  %v806_v15 = vld [vmem:[#allocation2 + $0x8] sm:$0xff]   ;;  %v807_v16 = vld [vmem:[#allocation2 + $0x10] sm:$0xff]   ;;  %s676_s29 = sshll.u32 %s1037_s20, 2 }
  0x2f   : > { %s289_s25 = scalar_lea.vmem %s1020_s0, %s674_s21  ;;  %v808_v17 = vld [vmem:[#allocation2 + $0x18] sm:$0xff]   ;;  %v809_v18 = vld [vmem:[#allocation2 + $0x20] sm:$0xff]   ;;  %v810_v19 = vld [vmem:[#allocation2 + $0x28] sm:$0xff]   ;;  %s295_s9 = scalar_lea.vmem %s1027_s7, %s676_s29 }
  0x30   : > { %v298_v2 = vld [vmem:[%s289_s25] sm:$0xff]  ;;  %v299_v3 = vld [vmem:[%s289_s25 + $0x8] sm:$0xff]  ;;  %v811_v30 = vld [vmem:[#allocation2 + $0x30] sm:$0xff]  }
  0x31   : > { %v300_v5 = vpack.c.bf16 %v299_v3, %v298_v2  ;;  %737 = vmatpush3.bf16.msra.mxu1 %v798_v7  ;;  %v677_v20 = vld [vmem:[%s1022_s2] ss:$0 sm:$0xff]  ;;  %v812_v31 = vld [vmem:[#allocation2 + $0x38] sm:$0xff]  }
  0x32   : > { %738 = vmatprep.subr.bf16.mxu1 %v856_v0  ;;  %v679_v32 = vld [vmem:[%s1024_s4] ss:$0 sm:$0xff] }
  0x33   : > { %731 = vmatmul.mubr.msk.bf16.vlgmr.msra.gmra.mrb[0].mxu0 %vm309_vm2, %v300_v5  ;;  %v688_v42 = vld [vmem:[%s1026_s6] ss:$0 sm:$0xff] }
  0x34   : > { %770 = vmatprep.mubr.msk.bf16.mxu0 %vm857_vm0, %v856_v0  ;;  %755 = vmatpush3.bf16.msra.mxu0 %v805_v14 }
  0x35   : > { %739 = vmatpush3.bf16.msra.mxu1 %v799_v8  ;;  %756 = vmatprep.subr.bf16.mxu0 %v856_v0 }
  0x36   : > { %740 = vmatprep.subr.bf16.mxu1 %v856_v0 }
  0x38   : > { %757 = vmatpush3.bf16.msra.mxu0 %v806_v15 }
  0x39   : > { %741 = vmatpush3.bf16.msra.mxu1 %v800_v9  ;;  %758 = vmatprep.subr.bf16.mxu0 %v856_v0 }
  0x3a   : > { %742 = vmatprep.subr.bf16.mxu1 %v856_v0 }
  0x3c   : > { %759 = vmatpush3.bf16.msra.mxu0 %v807_v16 }
  0x3d   : > { %743 = vmatpush3.bf16.msra.mxu1 %v801_v10  ;;  %760 = vmatprep.subr.bf16.mxu0 %v856_v0 }
  0x3e   : > { %744 = vmatprep.subr.bf16.mxu1 %v856_v0 }
  0x40   : > { %761 = vmatpush3.bf16.msra.mxu0 %v808_v17 }
  0x41   : > { %745 = vmatpush3.bf16.msra.mxu1 %v802_v11  ;;  %762 = vmatprep.subr.bf16.mxu0 %v856_v0 }
  0x42   : > { %746 = vmatprep.subr.bf16.mxu1 %v856_v0 }
  0x44   : > { %763 = vmatpush3.bf16.msra.mxu0 %v809_v18 }
  0x45   : > { %747 = vmatpush3.bf16.msra.mxu1 %v803_v12  ;;  %764 = vmatprep.subr.bf16.mxu0 %v856_v0 }
  0x46   : > { %748 = vmatprep.subr.bf16.mxu1 %v856_v0 }
  0x48   : > { %765 = vmatpush3.bf16.msra.mxu0 %v810_v19 }
  0x49   : > { %749 = vmatpush3.bf16.msra.mxu1 %v804_v13  ;;  %766 = vmatprep.subr.bf16.mxu0 %v856_v0 }
  0x4c   : > { %767 = vmatpush3.bf16.msra.mxu0 %v811_v30 }
  0x4d   : > { %768 = vmatprep.subr.bf16.mxu0 %v856_v0 }
  0x50   : > { %769 = vmatpush3.bf16.msra.mxu0 %v812_v31 }
 0x106   : > { %v351_v21 = vpop.f32.mrb[0].mxu0 }
 0x107   : > { %v352_v22 = vadd.f32 %v677_v20, %v351_v21  ;;  %v732_v23 = vpop.f32.mrb[1].mxu0 }
 0x108   : > { %v354_v24 = vpop.f32.mrb[2].mxu0 }
 0x109   : > { %v355_v25 = vadd.f32 %v677_v20, %v354_v24  ;;  %v733_v26 = vpop.f32.mrb[3].mxu0  ;;  %v358_v27 = vmax.f32 %v352_v22, 0.0 }
 0x10b   : > { %v359_v28 = vmax.f32 %v355_v25, 0.0 }
 0x10d   : > { %v360_v29 = vpack.c.bf16 %v359_v28, %v358_v27 }
 0x10f   : > { %751 = vmatmul.mubr.bf16.vlgmr.msra.gmra.mrb[0].mxu1 %v360_v29 }
 0x1e2   : > { %v466_v33 = vpop.f32.mrb[0].mxu1 }
 0x1e3   : > { %v467_v34 = vadd.f32 %v679_v32, %v466_v33  ;;  %v752_v35 = vpop.f32.mrb[1].mxu1 }
 0x1e4   : > { %v469_v36 = vpop.f32.mrb[2].mxu1 }
 0x1e5   : > { %v470_v37 = vadd.f32 %v679_v32, %v469_v36  ;;  %v753_v38 = vpop.f32.mrb[3].mxu1  ;;  %v473_v39 = vmax.f32 %v467_v34, 0.0 }
 0x1e7   : > { %v474_v40 = vmax.f32 %v470_v37, 0.0 }
 0x1e9   : > { %v475_v41 = vpack.c.bf16 %v474_v40, %v473_v39 }
 0x1eb   : > { %771 = vmatmul.mubr.bf16.vlgmr.msra.gmra.mrb[4].mxu0 %v475_v41 }
 0x2be   : > { %v581_v43 = vpop.f32.mrb[4].mxu0 }
 0x2bf   : > { %v772_v44 = vpop.f32.mrb[5].mxu0  ;;  %v582_v46 = vadd.f32 %v688_v42, %v581_v43 }
 0x2c0   : > { %v584_v45 = vpop.f32.mrb[6].mxu0 }
 0x2c1   : > { %v585_v47 = vadd.f32 %v688_v42, %v584_v45  ;;  %v773_v48 = vpop.f32.mrb[7].mxu0 }
 0x2c3   : > { %v706_v49 = vpack.c.bf16 %v585_v47, %v582_v46 }
 0x2c5   : > { %707 = vst [vmem:[%s295_s9] sm:$0xff] %v706_v49  }
 0x2c6 PF: > { %s18_s24 = sadd.s32 1, %s851_s24  }
 0x2c7   : > { %p15_p3 = scmp.ge.s32.totalorder %s18_s24, 4  }
 0x2c9   :  { %17 = sbr.rel (!%p15_p3) target bundleno = 1 (0x1), region = 83 }
 0x2d0   :  { %620 = vsyncpa [#allocation3], 1 }
 0x2d1   :  { %622 = vsyncpa [#allocation3 + $0x1], 1 }

</bundles_post_ra>
